<compile_context>
chip_gen: v5e
topology: v5e:2x2
jax: 0.10.0
libtpu: 0.0.40
codegen_flags: <defaults>
</compile_context>

<pallas_src>
import functools

import jax
import jax.numpy as jnp
from jax import lax
from jax.experimental import pallas as pl
from jax.experimental.pallas import tpu as pltpu

_NEG_INF = -1e30


def seqcls_kernel(x_ref, ws1_ref, ws2_ref, w1_ref, b1_ref, w2_ref, b2_ref,
                  out_ref, *, seq_valid, compute_dtype):
    """One batch tile of the SequenceClassification head.

    x_ref holds raw backbone activations (Bt, S1p, H) in `compute_dtype`, with
    the seq axis padded to a sublane-tile multiple.  The PyTorch `x[:, 1:, :]`
    slice is realized as a -inf mask on positions {0} U {>= seq_valid}: their
    softmax weight is exactly zero, so they contribute nothing to m.
    """
    Bt, S1p, H = x_ref.shape
    r = ws2_ref.shape[1]

    x = x_ref[...]                                                  # (Bt, S1p, H)

    # --- SelfAttention scores: ws2(tanh(ws1(x))) ------------------------------
    # Fold batch+seq into the matmul M dim; S1p is a sublane-tile multiple so
    # this reshape is layout-preserving (no VMEM copy).
    x2 = x.reshape(Bt * S1p, H)
    s = jnp.tanh(jnp.dot(x2, ws1_ref[...],
                         preferred_element_type=jnp.float32))       # (Bt*S1p, da) f32
    a = jnp.dot(s.astype(compute_dtype), ws2_ref[...],
                preferred_element_type=jnp.float32)                 # (Bt*S1p, r) f32
    a = a.reshape(Bt, S1p, r)

    # Mask the dropped leading token (pos 0) and the seq padding tail.
    pos = lax.broadcasted_iota(jnp.int32, a.shape, 1)
    a = jnp.where((pos >= 1) & (pos < seq_valid), a, _NEG_INF)

    # Softmax over the sequence axis; EUP reciprocal for the normalizer.
    a = a - jnp.max(a, axis=1, keepdims=True)
    e = jnp.exp(a)
    attn = e * pl.reciprocal(jnp.sum(e, axis=1, keepdims=True), approx=True)

    # --- m = bmm(attn^T, x): contract the seq axis with a batched dot_general
    # (no explicit transpose; r=4 is <2% of FLOPs, orientation left as-is). ----
    m = lax.dot_general(attn.astype(compute_dtype), x,
                        dimension_numbers=(((1,), (1,)), ((0,), (0,))),
                        preferred_element_type=jnp.float32)         # (Bt, r, H) f32

    # --- classifier: Linear(r*H, 256) -> ReLU -> Linear(256, Cp) --------------
    # (Bt, r, H) -> (Bt, r*H) is a tiny copy, amortized over the batch tile.
    flat = m.reshape(Bt, r * H).astype(compute_dtype)
    h1 = jnp.dot(flat, w1_ref[...],
                 preferred_element_type=jnp.float32) + b1_ref[...]  # (Bt, 256) f32
    h1 = jnp.maximum(h1, 0.0)
    logits = jnp.dot(h1.astype(compute_dtype), w2_ref[...],
                     preferred_element_type=jnp.float32) + b2_ref[...]
    out_ref[...] = logits.astype(out_ref.dtype)                     # lane-dense store


def sequence_classification_forward(hidden_states, ws1, ws2, w1, b1, w2, b2,
                                     *, batch_tile=32,
                                     compute_dtype=jnp.bfloat16):
    """hidden_states: (B, S+1, H) output of midi_former at the chosen layer.

    compute_dtype=jnp.bfloat16 (default) is the production path on v5e/v6e/v7x
    MXUs; f32 accumulation is kept via preferred_element_type.  On v7x (64 MiB
    VMEM) size batch_tile smaller (8-16) than on v5e/v6e (32-64), keeping the
    number of batch tiles even so both TensorCores get equal work.
    """
    B, S1, H = hidden_states.shape
    HID = w1.shape[1]
    C = w2.shape[1]
    da = ws1.shape[1]
    r = ws2.shape[1]

    itemsize = jnp.dtype(compute_dtype).itemsize
    sub = 8 * (4 // itemsize)                   # sublane tile: 8 (f32) / 16 (bf16)
    S1p = -(-S1 // sub) * sub                   # seq padded -> layout-preserving reshape

    Bt = -(-min(batch_tile, B) // 8) * 8        # batch tile, multiple of 8
    n_tiles = -(-B // Bt)
    Bp = n_tiles * Bt

    # Lane-dense output: pad class dim to a multiple of 128 (unmasked full vst).
    Cp = -(-C // 128) * 128

    # Cast activations ONCE in the wrapper (HBM traffic dominates; bf16 halves
    # it) and pad batch/seq.  Padded rows are masked / sliced off below.
    x = hidden_states.astype(compute_dtype)
    if Bp != B or S1p != S1:
        x = jnp.pad(x, ((0, Bp - B), (0, S1p - S1), (0, 0)))

    ws1c = ws1.astype(compute_dtype)
    ws2c = ws2.astype(compute_dtype)
    w1c = w1.astype(compute_dtype)
    w2c = jnp.pad(w2, ((0, 0), (0, Cp - C))).astype(compute_dtype)
    b1c = b1.reshape(1, HID).astype(jnp.float32)
    b2c = jnp.pad(b2.reshape(1, C), ((0, 0), (0, Cp - C))).astype(jnp.float32)

    # Constant-index weights/biases: single buffer (their block index never
    # changes), reclaiming VMEM for a larger activation tile.
    def const_spec(arr):
        return pl.BlockSpec(arr.shape, lambda b: (0,) * arr.ndim,
                            pipeline_mode=pl.Buffered(1))

    kernel = functools.partial(seqcls_kernel, seq_valid=S1,
                               compute_dtype=compute_dtype)

    # Explicit VMEM budget: double-buffered activation tile + single-buffered
    # weights + double-buffered output tile + f32 intermediates + headroom.
    x_tile = Bt * S1p * H * itemsize
    w_bytes = ((ws1c.size + ws2c.size + w1c.size + w2c.size) * itemsize
               + (b1c.size + b2c.size) * 4)
    interm = (Bt * S1p * (H * 4 + da * (4 + itemsize) + r * 16)
              + Bt * (r * H + HID + Cp) * 8)
    out_tile = Bt * Cp * 4
    vmem_limit = 2 * x_tile + w_bytes + 2 * out_tile + interm + (8 << 20)
    vmem_limit = int(min(max(vmem_limit, 32 << 20), 128 << 20))

    out = pl.pallas_call(
        kernel,
        out_shape=jax.ShapeDtypeStruct((Bp, Cp), jnp.float32),
        grid_spec=pltpu.PrefetchScalarGridSpec(
            num_scalar_prefetch=0,
            grid=(n_tiles,),
            in_specs=[
                pl.BlockSpec((Bt, S1p, H), lambda b: (b, 0, 0)),  # activation tile
                const_spec(ws1c),   # (H, da)
                const_spec(ws2c),   # (da, r)
                const_spec(w1c),    # (r*H, 256)
                const_spec(b1c),    # (1, 256)
                const_spec(w2c),    # (256, Cp)
                const_spec(b2c),    # (1, Cp)
            ],
            out_specs=pl.BlockSpec((Bt, Cp), lambda b: (b, 0)),
        ),
        # Batch tiles are independent -> megacore (v7x: 2 TCs) shards the grid.
        compiler_params=pltpu.CompilerParams(
            dimension_semantics=("parallel",),
            vmem_limit_bytes=vmem_limit),
    )(x, ws1c, ws2c, w1c, b1c, w2c, b2c)

    return out[:B, :C]


def reference_forward(hidden_states, ws1, ws2, w1, b1, w2, b2):
    x = hidden_states[:, 1:, :]
    a = jnp.einsum("bsd,dr->bsr", jnp.tanh(jnp.einsum("bsh,ha->bsa", x, ws1)), ws2)
    attn = jax.nn.softmax(a, axis=1)                       # softmax over seq (dim=1)
    attn_mat = jnp.transpose(attn, (0, 2, 1))              # (B, r, S)
    m = jnp.einsum("brs,bsh->brh", attn_mat, x)            # (B, r, H)
    flat = m.reshape(m.shape[0], -1)
    h1 = jnp.maximum(flat @ w1 + b1, 0.0)
    return h1 @ w2 + b2


if __name__ == "__main__":
    # Small shapes consistent with the module: hs=32, da=128, r=4, class_num=8.
    # B=16 with batch_tile=8 -> 2 grid tiles (even split across v7x's two TCs).
    # TODO(synk): production H (>=256) keeps the lane dim full; at H=32 each x
    # vreg is mostly padding — demo-size artifact only.
    B, S_plus_1, H = 16, 9, 32     # seq length 9 -> 8 valid after dropping token 0
    da, r, HID, C = 128, 4, 256, 8

    key = jax.random.PRNGKey(0)
    k = jax.random.split(key, 7)
    hidden_states = jax.random.normal(k[0], (B, S_plus_1, H), jnp.float32)

    # Deterministic synthetic parameters (module __init__ shapes).
    ws1 = jax.random.normal(k[1], (H, da), jnp.float32) * 0.05      # nn.Linear(hs, da, bias=False)
    ws2 = jax.random.normal(k[2], (da, r), jnp.float32) * 0.05      # nn.Linear(da, r, bias=False)
    w1 = jax.random.normal(k[3], (H * r, HID), jnp.float32) * 0.05  # nn.Linear(hs*r, 256)
    b1 = jax.random.normal(k[4], (1, HID), jnp.float32) * 0.05
    w2 = jax.random.normal(k[5], (HID, C), jnp.float32) * 0.05      # nn.Linear(256, class_num)
    b2 = jax.random.normal(k[6], (1, C), jnp.float32) * 0.05

    # TODO(synk): midi_former transformer backbone is external; kernel consumes
    # its hidden_states[layer] directly.
    ref = reference_forward(hidden_states, ws1, ws2, w1, b1, w2, b2)

    # f32 path: tight correctness check of the kernel semantics
    # (approx-reciprocal softmax normalizer adds ~1e-4..1e-3 relative error).
    out_f32 = sequence_classification_forward(
        hidden_states, ws1, ws2, w1, b1, w2, b2,
        batch_tile=8, compute_dtype=jnp.float32)
    out_f32 = jax.block_until_ready(out_f32)
    assert out_f32.shape == (B, C)
    assert jnp.allclose(out_f32, ref, atol=2e-3, rtol=2e-3)

    # bf16 path (default): production configuration on v5e/v6e/v7x.
    out_bf16 = sequence_classification_forward(
        hidden_states, ws1, ws2, w1, b1, w2, b2, batch_tile=8)
    out_bf16 = jax.block_until_ready(out_bf16)
    assert out_bf16.shape == (B, C)
    assert jnp.allclose(out_bf16, ref, atol=2e-2, rtol=2e-2)

    print("KERNEL_OK")
</pallas_src>

<mosaic_0001>
module attributes {stable_mosaic.version = 11 : i64} {
  func.func @seqcls_kernel(%arg0: i32, %arg1: memref<8x16x32xf32, #tpu.memory_space<vmem>>, %arg2: memref<32x128xf32, #tpu.memory_space<vmem>>, %arg3: memref<128x4xf32, #tpu.memory_space<vmem>>, %arg4: memref<128x256xf32, #tpu.memory_space<vmem>>, %arg5: memref<1x256xf32, #tpu.memory_space<vmem>>, %arg6: memref<256x128xf32, #tpu.memory_space<vmem>>, %arg7: memref<1x128xf32, #tpu.memory_space<vmem>>, %arg8: memref<8x128xf32, #tpu.memory_space<vmem>>) attributes {dimension_semantics = [#tpu.dimension_semantics<parallel>], iteration_bounds = array<i64: 2>, scalar_prefetch = 0 : i64, scratch_operands = 0 : i64, tpu.core_type = #tpu.core_type<tc>, window_params = [{transform_indices = @transform_0, window_bounds = array<i64: 8, 16, 32>}, {pipeline_mode = #tpu.pipeline_mode<synchronous>, transform_indices = @transform_1, window_bounds = array<i64: 32, 128>}, {pipeline_mode = #tpu.pipeline_mode<synchronous>, transform_indices = @transform_2, window_bounds = array<i64: 128, 4>}, {pipeline_mode = #tpu.pipeline_mode<synchronous>, transform_indices = @transform_3, window_bounds = array<i64: 128, 256>}, {pipeline_mode = #tpu.pipeline_mode<synchronous>, transform_indices = @transform_4, window_bounds = array<i64: 1, 256>}, {pipeline_mode = #tpu.pipeline_mode<synchronous>, transform_indices = @transform_5, window_bounds = array<i64: 256, 128>}, {pipeline_mode = #tpu.pipeline_mode<synchronous>, transform_indices = @transform_6, window_bounds = array<i64: 1, 128>}, {transform_indices = @transform_7, window_bounds = array<i64: 8, 128>}]} {
    %c0 = arith.constant 0 : index
    %c0_0 = arith.constant 0 : index
    %c0_1 = arith.constant 0 : index
    %0 = vector.load %arg1[%c0, %c0_0, %c0_1] : memref<8x16x32xf32, #tpu.memory_space<vmem>>, vector<8x16x32xf32>
    %1 = vector.shape_cast %0 : vector<8x16x32xf32> to vector<128x32xf32>
    %c0_2 = arith.constant 0 : index
    %c0_3 = arith.constant 0 : index
    %2 = vector.load %arg2[%c0_2, %c0_3] : memref<32x128xf32, #tpu.memory_space<vmem>>, vector<32x128xf32>
    %cst = arith.constant dense<0.000000e+00> : vector<128x128xf32>
    %3 = tpu.matmul %1, %2, %cst {dimension_numbers = #tpu.dot_dimension_numbers<[1], [0], [0], [1], [0, 0, 1, 1], [], []>} : vector<128x32xf32>, vector<32x128xf32>, vector<128x128xf32> -> vector<128x128xf32>
    %4 = math.tanh %3 : vector<128x128xf32>
    %c0_4 = arith.constant 0 : index
    %c0_5 = arith.constant 0 : index
    %5 = vector.load %arg3[%c0_4, %c0_5] : memref<128x4xf32, #tpu.memory_space<vmem>>, vector<128x4xf32>
    %cst_6 = arith.constant dense<0.000000e+00> : vector<128x4xf32>
    %6 = tpu.matmul %4, %5, %cst_6 {dimension_numbers = #tpu.dot_dimension_numbers<[1], [0], [0], [1], [0, 0, 1, 1], [], []>} : vector<128x128xf32>, vector<128x4xf32>, vector<128x4xf32> -> vector<128x4xf32>
    %7 = vector.shape_cast %6 : vector<128x4xf32> to vector<8x16x4xf32>
    %8 = tpu.iota {dimensions = array<i32: 1>} : vector<8x16x4xi32>
    %c1_i32 = arith.constant 1 : i32
    %9 = vector.broadcast %c1_i32 : i32 to vector<8x16x4xi32>
    %10 = arith.cmpi sge, %8, %9 : vector<8x16x4xi32>
    %c9_i32 = arith.constant 9 : i32
    %11 = vector.broadcast %c9_i32 : i32 to vector<8x16x4xi32>
    %12 = arith.cmpi slt, %8, %11 : vector<8x16x4xi32>
    %13 = arith.andi %10, %12 : vector<8x16x4xi1>
    %cst_7 = arith.constant -1.000000e+30 : f32
    %14 = vector.broadcast %cst_7 : f32 to vector<8x16x4xf32>
    %15 = arith.select %13, %7, %14 : vector<8x16x4xi1>, vector<8x16x4xf32>
    %cst_8 = arith.constant dense<0xFF800000> : vector<8x4xf32>
    %16 = vector.multi_reduction <maximumf>, %15, %cst_8 [1] : vector<8x16x4xf32> to vector<8x4xf32>
    %17 = vector.shape_cast %16 : vector<8x4xf32> to vector<8x1x4xf32>
    %18 = vector.broadcast %17 : vector<8x1x4xf32> to vector<8x16x4xf32>
    %19 = arith.subf %15, %18 : vector<8x16x4xf32>
    %20 = math.exp %19 : vector<8x16x4xf32>
    %cst_9 = arith.constant dense<0.000000e+00> : vector<8x4xf32>
    %21 = vector.multi_reduction <add>, %20, %cst_9 [1] : vector<8x16x4xf32> to vector<8x4xf32>
    %22 = vector.shape_cast %21 : vector<8x4xf32> to vector<8x1x4xf32>
    %23 = tpu.reciprocal %22 {approx = true} : vector<8x1x4xf32> -> vector<8x1x4xf32>
    %24 = vector.broadcast %23 : vector<8x1x4xf32> to vector<8x16x4xf32>
    %25 = arith.mulf %20, %24 : vector<8x16x4xf32>
    %cst_10 = arith.constant dense<0.000000e+00> : vector<8x4x32xf32>
    %26 = tpu.matmul %25, %0, %cst_10 {dimension_numbers = #tpu.dot_dimension_numbers<[1], [1], [2], [2], [0, 0, 0, 2, 1, 2], [0], [0]>} : vector<8x16x4xf32>, vector<8x16x32xf32>, vector<8x4x32xf32> -> vector<8x4x32xf32>
    %27 = vector.shape_cast %26 : vector<8x4x32xf32> to vector<8x128xf32>
    %c0_11 = arith.constant 0 : index
    %c0_12 = arith.constant 0 : index
    %28 = vector.load %arg4[%c0_11, %c0_12] : memref<128x256xf32, #tpu.memory_space<vmem>>, vector<128x256xf32>
    %cst_13 = arith.constant dense<0.000000e+00> : vector<8x256xf32>
    %29 = tpu.matmul %27, %28, %cst_13 {dimension_numbers = #tpu.dot_dimension_numbers<[1], [0], [0], [1], [0, 0, 1, 1], [], []>} : vector<8x128xf32>, vector<128x256xf32>, vector<8x256xf32> -> vector<8x256xf32>
    %c0_14 = arith.constant 0 : index
    %c0_15 = arith.constant 0 : index
    %30 = vector.load %arg5[%c0_14, %c0_15] : memref<1x256xf32, #tpu.memory_space<vmem>>, vector<1x256xf32>
    %31 = vector.broadcast %30 : vector<1x256xf32> to vector<8x256xf32>
    %32 = arith.addf %29, %31 : vector<8x256xf32>
    %cst_16 = arith.constant 0.000000e+00 : f32
    %33 = vector.broadcast %cst_16 : f32 to vector<8x256xf32>
    %34 = arith.maximumf %32, %33 : vector<8x256xf32>
    %c0_17 = arith.constant 0 : index
    %c0_18 = arith.constant 0 : index
    %35 = vector.load %arg6[%c0_17, %c0_18] : memref<256x128xf32, #tpu.memory_space<vmem>>, vector<256x128xf32>
    %cst_19 = arith.constant dense<0.000000e+00> : vector<8x128xf32>
    %36 = tpu.matmul %34, %35, %cst_19 {dimension_numbers = #tpu.dot_dimension_numbers<[1], [0], [0], [1], [0, 0, 1, 1], [], []>} : vector<8x256xf32>, vector<256x128xf32>, vector<8x128xf32> -> vector<8x128xf32>
    %c0_20 = arith.constant 0 : index
    %c0_21 = arith.constant 0 : index
    %37 = vector.load %arg7[%c0_20, %c0_21] : memref<1x128xf32, #tpu.memory_space<vmem>>, vector<1x128xf32>
    %38 = vector.broadcast %37 : vector<1x128xf32> to vector<8x128xf32>
    %39 = arith.addf %36, %38 : vector<8x128xf32>
    %c0_22 = arith.constant 0 : index
    %c0_23 = arith.constant 0 : index
    %40 = vector.load %arg8[%c0_22, %c0_23] : memref<8x128xf32, #tpu.memory_space<vmem>>, vector<8x128xf32>
    tpu.vector_store %arg8[%c0_22, %c0_23], %39 {strides = array<i32>} : memref<8x128xf32, #tpu.memory_space<vmem>>, vector<8x128xf32>,
    return
  }
  func.func @transform_0(%arg0: i32) -> (i32, i32, i32) {
    %c0_i32 = arith.constant 0 : i32
    %c0_i32_0 = arith.constant 0 : i32
    %c0_i32_1 = arith.constant 0 : i32
    return %arg0, %c0_i32, %c0_i32_0 : i32, i32, i32
  }
  func.func @transform_1(%arg0: i32) -> (i32, i32) {
    %c0_i32 = arith.constant 0 : i32
    %c0_i32_0 = arith.constant 0 : i32
    %c0_i32_1 = arith.constant 0 : i32
    return %c0_i32, %c0_i32_0 : i32, i32
  }
  func.func @transform_2(%arg0: i32) -> (i32, i32) {
    %c0_i32 = arith.constant 0 : i32
    %c0_i32_0 = arith.constant 0 : i32
    %c0_i32_1 = arith.constant 0 : i32
    return %c0_i32, %c0_i32_0 : i32, i32
  }
  func.func @transform_3(%arg0: i32) -> (i32, i32) {
    %c0_i32 = arith.constant 0 : i32
    %c0_i32_0 = arith.constant 0 : i32
    %c0_i32_1 = arith.constant 0 : i32
    return %c0_i32, %c0_i32_0 : i32, i32
  }
  func.func @transform_4(%arg0: i32) -> (i32, i32) {
    %c0_i32 = arith.constant 0 : i32
    %c0_i32_0 = arith.constant 0 : i32
    %c0_i32_1 = arith.constant 0 : i32
    return %c0_i32, %c0_i32_0 : i32, i32
  }
  func.func @transform_5(%arg0: i32) -> (i32, i32) {
    %c0_i32 = arith.constant 0 : i32
    %c0_i32_0 = arith.constant 0 : i32
    %c0_i32_1 = arith.constant 0 : i32
    return %c0_i32, %c0_i32_0 : i32, i32
  }
  func.func @transform_6(%arg0: i32) -> (i32, i32) {
    %c0_i32 = arith.constant 0 : i32
    %c0_i32_0 = arith.constant 0 : i32
    %c0_i32_1 = arith.constant 0 : i32
    return %c0_i32, %c0_i32_0 : i32, i32
  }
  func.func @transform_7(%arg0: i32) -> (i32, i32) {
    %c0_i32 = arith.constant 0 : i32
    %c0_i32_0 = arith.constant 0 : i32
    return %arg0, %c0_i32 : i32, i32
  }
}

</mosaic_0001>

<bundles_post_ra>
// kernel: tpu_custom_call.1
= control target key start
LH: loop header
LB: loop body
LE: loop exit
PB: predicated region body
PF: predicated region fallthrough
CT: control target
= control target key end

     0   :  { %s2426_s0 = inlined_call_operand.hbm [shape: f32[16,16,32], index: 0, kind: input, shape index: {}]   ;;  %s2427_s1 = inlined_call_operand.vmem [shape: f32[32,128], index: 1, kind: input, shape index: {}]   ;;  %s2428_s2 = inlined_call_operand.vmem [shape: f32[128,4], index: 2, kind: input, shape index: {}]   ;;  %s2429_s3 = inlined_call_operand.hbm [shape: f32[128,256], index: 3, kind: input, shape index: {}]   ;;  %s2430_s4 = inlined_call_operand.vmem [shape: f32[1,256], index: 4, kind: input, shape index: {}]   ;;  %s2431_s5 = inlined_call_operand.hbm [shape: f32[256,128], index: 5, kind: input, shape index: {}]   ;;  %s2432_s6 = inlined_call_operand.vmem [shape: f32[1,128], index: 6, kind: input, shape index: {}]   ;;  %s2433_s7 = inlined_call_operand.hbm [shape: f32[16,128], index: 7, kind: output, shape index: {}]  }
   0x1   :  { %2436 = sst [smem:[#allocation12_spill]] %s2429_s3 }
   0x2   :  { %12 = vsyncpa [#allocation3], 0 }
   0x3   :  { %14 = vsyncpa [#allocation3 + $0x1], 0 }
   0x4   :  { %15 = vsyncpa [#allocation6], 0 }
   0x5   :  { %16 = vsyncpa [#allocation4], 0 }
   0x6   :  { %18 = vsyncpa [#allocation4 + $0x1], 0  ;;  %s2015_s24 = smov 0   ;;  %s2017_s25 = smov 0  }
   0x7   :  { %s2019_s26 = smov 0   ;;  %s2021_s27 = smov 0  }
   0x8 LB: > { %s2036_s28 = sadd.s32 4294967295, %s1962_s27   ;;  %s1584_s29 = sadd.s32 4294967294, %s1962_s27   ;;  %s1962_s27 = sphi %s2021_s27, %s2449_s27   ;;  %s1958_s26 = sphi %s2019_s26, %s2448_s26   ;;  %s1954_s25 = sphi %s2017_s25, %s2447_s25   ;;  %s1950_s24 = sphi %s2015_s24, %s2446_s24  }
   0x9   : > { %p44_p0 = scmp.ne.s32.totalorder %s1954_s25, %s1950_s24  ;;  %p45_p1 = scmp.eq.s32.totalorder %s2036_s28, 0 }
   0xa   : > { %p194_p2 = scmp.eq.s32.totalorder %s2036_s28, 1  ;;  %p200_p3 = scmp.eq.s32.totalorder %s1584_s29, 1 }
   0xb   : > { %p2045_p4 = por %p45_p1, %p44_p0  ;;  %p1585_p5 = scmp.ge.s32.totalorder %s1962_s27, 1 }
   0xc   : > { %p2050_p6 = por %p200_p3, %p44_p0  ;;  %p207_p7 = scmp.lt.s32.totalorder %s1962_s27, 3 }
   0xd   : > { %s2439_s3 = sld [smem:[#allocation12_spill]]  ;;  %s1964_s13 = smov [#allocation5]  }
   0xe   : > { %p2058_p8 = pnand %p1585_p5, %p207_p7  ;;  %s226_s14 = sshll.u32 %s1964_s13, 4  ;;  %s227_s14 = int_to_ptr.vmem [resolvable:$true] %s226_s14 }
   0xf   : > { %s241_s17 = sshll.u32 %s2431_s5, 4  ;;  %s1965_s18 = smov 256   ;;  %s242_s17 = int_to_ptr.hbm [resolvable:$true] %s241_s17 }
  0x10   : > { %p1656_p9 = pneg %p2058_p8  ;;  %s1966_s19 = smov 16  }
  0x11   : > { %s1967_s20 = smov [#allocation7]   ;;  %s2434_s22 = smov 128  }
  0x12   : > { %p1657_p10 = pnand %p1656_p9, %p45_p1  ;;  %s243_s21 = sshll.u32 %s1967_s20, 4  ;;  %s244_s21 = int_to_ptr.vmem [resolvable:$true] %s243_s21 }
  0x13   : > { %s224_s11 = sshll.u32 %s2439_s3, 4  ;;  %s2435_s23 = smov 8   ;;  %s225_s11 = int_to_ptr.hbm [resolvable:$true] %s224_s11 }
  0x14   : > { %1659 = dma.hbm_to_vmem [thread:$0]  (!%p1657_p10), %s225_s11, 4096, %s227_s14, [#allocation6], %s1965_s18, %s1965_s18, %s1966_s19  }
  0x15   : > { %1662 = dma.hbm_to_vmem [thread:$0]  (!%p1657_p10), %s242_s17, 4096, %s244_s21, [#allocation6], %s2434_s22, %s2434_s22, %s2435_s23  }
  0x16   : > { %s2074_s29 = sadd.s32 1, %s1962_s27   ;;  %s31_s10 = sadd.s32 1, %s1958_s26 }
  0x17   : > { %s28_s9 = ssub.s32 %s1962_s27, %s2074_s29  ;;  %p38_p13 = scmp.ne.s32.totalorder %s1958_s26, %s1954_s25 }
  0x18   : > { %p29_p12 = scmp.eq.s32.totalorder %s28_s9, 0  ;;  %p39_p0 = scmp.eq.s32.totalorder %s1962_s27, 0 }
  0x19   : > { %p2087_p5 = por %p194_p2, %p38_p13  ;;  %p1673_p7 = scmp.lt.s32.totalorder %s1962_s27, 2 }
  0x1a   : > { %s2083_s11 = scalar_select %p29_p12, %s1958_s26, %s31_s10  }
  0x1b   : > { %p40_p3 = por %p39_p0, %p38_p13  ;;  %s260_s14 = sand.u32 1, %s1958_s26  }
  0x1c   : > { %s1589_s15 = sshll.u32 %s260_s14, 7  ;;  %s1627_s16 = sshll.u32 %s1962_s27, 7 }
  0x1d   : > { %s270_s19 = scalar_lea.hbm %s2426_s0, %s1627_s16  ;;  %s264_s20 = scalar_lea.vmem [#allocation2], %s1589_s15 }
  0x1e   : > { %s273_s21 = sshll.u32 %s264_s20, 4  ;;  %s271_s9 = sshll.u32 %s270_s19, 4  ;;  %s274_s21 = int_to_ptr.vmem [resolvable:$true] %s273_s21  ;;  %s272_s9 = int_to_ptr.hbm [resolvable:$true] %s271_s9 }
  0x1f   : > { %p2097_p9 = pnand %p1673_p7, %p40_p3  ;;  %s261_s22 = scalar_lea.sflag [#allocation3], %s260_s14 }
  0x20   : > { %s1862_s23 = sshra.s32 %s272_s9, 4  ;;  %s1869_s17 = scalar_lea.hbm %s2426_s0, 256  ;;  %s1863_s23 = int_to_ptr.hbm [resolvable:$true] %s1862_s23 }
  0x21   : > { %s1864_s3 = scalar_lea.hbm %s1863_s23, 128  ;;  %p1866_p10 = pneg %p2097_p9 }
  0x22   : > { %p1865_p2 = scmp.ne.s32.totalorder %s1863_s23, %s1864_s3  ;;  %p1870_p0 = scmp.lt.s32.totalorder %s1863_s23, %s2426_s0 }
  0x23   : > { %p1871_p3 = scmp.lt.s32.totalorder %s1869_s17, %s1864_s3 }
  0x24   : > { %p1867_p12 = pnand %p1866_p10, %p1865_p2 }
  0x25   : > { %p1872_p7 = por %p1871_p3, %p1870_p0 }
  0x26   : > { %p1868_p13 = pneg %p1867_p12 }
  0x28   : > { %p1873_p11 = pnand %p1872_p7, %p1868_p13 }
  0x2a   : > { %1876 = shalt.err (!%p1873_p11)
}
  0x2b   : > { %s2443_s14 = smov 8   ;;  %s2444_s20 = smov 128  }
  0x2c   : > { %1666 = dma.hbm_to_vmem [thread:$0]  (!%p2097_p9), %s272_s9, 2048, %s274_s21, %s261_s22, %s2444_s20, %s2444_s20, %s2443_s14  }
  0x2d   : > { %285 = sbr.rel (%p2058_p8) target bundleno = 1204 (0x4b4), region = 48  ;;  %s2117_s16 = sand.u32 (!%p2058_p8), 1, %s1954_s25  }
  0x2e   : > { %s1594_s23 = sshll.u32 (!%p2058_p8), %s2117_s16, 7  ;;  %s288_s3 = scalar_lea.sflag (!%p2058_p8), [#allocation3], %s2117_s16 }
  0x2f   : > { %s2121_s15 = scalar_lea.vmem (!%p2058_p8), [#allocation2], %s1594_s23 }
  0x32   : > { %1937 = dma.done.wait (%p2045_p4), %s288_s3, 2048  }
  0x33   : > { %1939 = vsyncadd (%p2045_p4), %s288_s3, 4294965248 }
  0x34   : > { %1941 = dma.done.wait (%p45_p1), [#allocation6], 8192  }
  0x35   : > { %1943 = vsyncadd (%p45_p1), [#allocation6], 4294959104  ;;  %v353_v0 = vld [vmem:[%s2427_s1 + $0x18] sm:$0xff]  ;;  %v352_v1 = vld [vmem:[%s2427_s1 + $0x10] sm:$0xff]  ;;  %vm354_vm0 = vcmask 261120   ;;  %vm590_vm3 = vcmask 31744  }
  0x36   : > { %415 = vmatpush.msra.mxu0 %v353_v0  ;;  %v351_v2 = vld [vmem:[%s2427_s1 + $0x8] sm:$0xff]  ;;  %v337_v3 = vld [vmem:[%s2121_s15 + $0x18] sm:$0xff]  ;;  %v350_v4 = vld [vmem:[%s2427_s1] sm:$0xff]  ;;  %vm839_vm4 = vcmask 130048   ;;  %vm1249_vm5 = vcmask 1047556   ;;  %s1973_s22 = smov 64  }
  0x37   : > { %912 = vmatpush.msra.mxu3 %v337_v3  ;;  %v336_v5 = vld [vmem:[%s2121_s15 + $0x10] sm:$0xff]  ;;  %v2146_v6 = vld [vmem:[%s2121_s15] sm:$0xff]  ;;  %v2151_v7 = vld [vmem:[%s2121_s15 + $0x8] sm:$0xff]  ;;  %s1974_s21 = smov 32   ;;  %vm1318_vm6 = vcmask 523264   ;;  %vm1320_vm7 = vcmask 785408  }
  0x38   : > { %416 = vmatpush.msra.mxu0 %v352_v1  ;;  %v341_v8 = vld [vmem:[%s2121_s15 + $0x38] sm:$0xff]  ;;  %v340_v9 = vld [vmem:[%s2121_s15 + $0x30] sm:$0xff]  ;;  %v2160_v10 = vld [vmem:[%s2121_s15 + $0x20] sm:$0xff]  ;;  %s1597_s10 = sshll.u32 %s2117_s16, 3  ;;  %s1623_s17 = sshll.u32 %s2036_s28, 3 }
  0x39   : > { %913 = vmatpush.msra.mxu3 %v336_v5  ;;  %v2165_v11 = vld [vmem:[%s2121_s15 + $0x28] sm:$0xff]  ;;  %v2172_v12 = vld [vmem:[%s2121_s15 + $0x40] sm:$0xff]  ;;  %v499_v13 = vld [vmem:[%s2428_s2 + $0x78] sm:$0xff]  ;;  %s1490_s23 = scalar_lea.hbm %s2433_s7, %s1623_s17  ;;  %s332_s3 = scalar_lea.vmem [#allocation8], %s1597_s10 }
  0x3a   : > { %417 = vmatpush.msra.mxu0 %v351_v2  ;;  %500 = vmatpush.msra.mxu1 %v499_v13  ;;  %v2180_v14 = vld [vmem:[%s2121_s15 + $0x48] sm:$0xff]  ;;  %v498_v15 = vld [vmem:[%s2428_s2 + $0x70] sm:$0xff]  ;;  %v496_v17 = vld [vmem:[%s2428_s2 + $0x60] sm:$0xff]  ;;  %s1492_s12 = sshll.u32 %s332_s3, 4  ;;  %s1480_s28 = scalar_lea.sflag [#allocation4], %s2117_s16  ;;  %s1493_s12 = int_to_ptr.vmem [resolvable:$true] %s1492_s12 }
  0x3b   : > { %1022 = vmatpush.msrb.mxu3 %v341_v8  ;;  %1628 = vmatpush.msra.mxu2 %v499_v13  ;;  %v497_v16 = vld [vmem:[%s2428_s2 + $0x68] sm:$0xff]  ;;  %v495_v18 = vld [vmem:[%s2428_s2 + $0x58] sm:$0xff]  ;;  %v2197_v19 = vld [vmem:[%s2121_s15 + $0x50] sm:$0xff]  ;;  %s1912_s10 = scalar_lea.hbm %s2433_s7, 16 }
  0x3c   : > { %418 = vmatpush.msra.mxu0 %v350_v4  ;;  %501 = vmatpush.msra.mxu1 %v498_v15  ;;  %v494_v20 = vld [vmem:[%s2428_s2 + $0x50] sm:$0xff]  ;;  %v493_v21 = vld [vmem:[%s2428_s2 + $0x48] sm:$0xff]  ;;  %v492_v22 = vld [vmem:[%s2428_s2 + $0x40] sm:$0xff]  ;;  %v565_v4 = vlaneseq }
  0x3d   : > { %1598 = vmatmul.msk.f32.vlgmr.msra.gmra.mxu0 %vm354_vm0, %v2146_v6  ;;  %1023 = vmatpush.msrb.mxu3 %v340_v9  ;;  %v491_v23 = vld [vmem:[%s2428_s2 + $0x38] sm:$0xff]  ;;  %v490_v25 = vld [vmem:[%s2428_s2 + $0x30] sm:$0xff]  ;;  %v489_v26 = vld [vmem:[%s2428_s2 + $0x28] sm:$0xff] }
  0x3e   : > { %1629 = vmatpush.msra.mxu2 %v498_v15  ;;  %502 = vmatpush.msra.mxu1 %v497_v16  ;;  %v2214_v24 = vld [vmem:[%s2121_s15 + $0x58] sm:$0xff]  ;;  %v488_v27 = vld [vmem:[%s2428_s2 + $0x20] sm:$0xff]  ;;  %v486_v30 = vld [vmem:[%s2428_s2 + $0x10] sm:$0xff] }
  0x3f   : > { %v2228_v28 = vld [vmem:[%s2121_s15 + $0x60] sm:$0xff]  ;;  %v487_v29 = vld [vmem:[%s2428_s2 + $0x18] sm:$0xff]  ;;  %v485_v31 = vld [vmem:[%s2428_s2 + $0x8] sm:$0xff] }
  0x40   : > { %1630 = vmatpush.msra.mxu2 %v497_v16  ;;  %503 = vmatpush.msra.mxu1 %v496_v17  ;;  %v484_v32 = vld [vmem:[%s2428_s2] sm:$0xff]  ;;  %v2245_v33 = vld [vmem:[%s2121_s15 + $0x68] sm:$0xff]  ;;  %v2252_v34 = vld [vmem:[%s2121_s15 + $0x70] sm:$0xff] }
  0x41   : > { %v2257_v35 = vld [vmem:[%s2121_s15 + $0x78] sm:$0xff]  ;;  %s1972_s15 = smov 96  }
  0x42   : > { %1631 = vmatpush.msra.mxu2 %v496_v17  ;;  %504 = vmatpush.msra.mxu1 %v495_v18 }
  0x44   : > { %1632 = vmatpush.msra.mxu2 %v495_v18  ;;  %505 = vmatpush.msra.mxu1 %v494_v20 }
  0x45   : > { %1599 = vmatmul.msk.f32.gmra.mxu0 %vm354_vm0, %v2151_v7 }
  0x46   : > { %1633 = vmatpush.msra.mxu2 %v494_v20  ;;  %506 = vmatpush.msra.mxu1 %v493_v21 }
  0x48   : > { %1634 = vmatpush.msra.mxu2 %v493_v21  ;;  %507 = vmatpush.msra.mxu1 %v492_v22 }
  0x4a   : > { %1635 = vmatpush.msra.mxu2 %v492_v22  ;;  %508 = vmatpush.msra.mxu1 %v491_v23 }
  0x4c   : > { %1636 = vmatpush.msra.mxu2 %v491_v23  ;;  %509 = vmatpush.msra.mxu1 %v490_v25 }
  0x4d   : > { %1600 = vmatmul.msk.f32.gmra.mxu0 %vm354_vm0, %v336_v5 }
  0x4e   : > { %1637 = vmatpush.msra.mxu2 %v490_v25  ;;  %510 = vmatpush.msra.mxu1 %v489_v26 }
  0x50   : > { %1638 = vmatpush.msra.mxu2 %v489_v26  ;;  %511 = vmatpush.msra.mxu1 %v488_v27 }
  0x52   : > { %1639 = vmatpush.msra.mxu2 %v488_v27  ;;  %512 = vmatpush.msra.mxu1 %v487_v29 }
  0x54   : > { %1640 = vmatpush.msra.mxu2 %v487_v29  ;;  %513 = vmatpush.msra.mxu1 %v486_v30 }
  0x55   : > { %1601 = vmatmul.msk.f32.gmra.mxu0 %vm354_vm0, %v337_v3 }
  0x56   : > { %1641 = vmatpush.msra.mxu2 %v486_v30  ;;  %514 = vmatpush.msra.mxu1 %v485_v31 }
  0x58   : > { %1642 = vmatpush.msra.mxu2 %v485_v31  ;;  %515 = vmatpush.msra.mxu1 %v484_v32 }
  0x5a   : > { %1643 = vmatpush.msra.mxu2 %v484_v32 }
  0x5c   : > { %857 = vmatpush.msrb.mxu2 %v2151_v7 }
  0x5d   : > { %1602 = vmatmul.msk.f32.gmra.mxu0 %vm354_vm0, %v2160_v10 }
  0x5e   : > { %858 = vmatpush.msrb.mxu2 %v2146_v6  ;;  %v2263_v6 = vshrl.u32 %v565_v4, 7 }
  0x60   : > { %v2266_v7 = vadd.s32 8, %v2263_v6  ;;  %vm568_vm1 = vcmp.ge.s32.totalorder %v2263_v6, 1 }
  0x62   : > { %vm571_vm2 = vcmp.lt.s32.totalorder %v2266_v7, 9 }
  0x65   : > { %1603 = vmatmul.msk.f32.gmra.mxu0 %vm354_vm0, %v2165_v11 }
  0x6d   : > { %1604 = vmatmul.msk.f32.gmra.mxu0 %vm354_vm0, %v340_v9 }
  0x75   : > { %1605 = vmatmul.msk.f32.gmra.mxu0 %vm354_vm0, %v341_v8 }
  0x7d   : > { %1606 = vmatmul.msk.f32.gmra.mxu0 %vm354_vm0, %v2172_v12 }
  0x85   : > { %1607 = vmatmul.msk.f32.gmra.mxu0 %vm354_vm0, %v2180_v14 }
  0x8d   : > { %1608 = vmatmul.msk.f32.gmra.mxu0 %vm354_vm0, %v2197_v19 }
  0x95   : > { %1609 = vmatmul.msk.f32.gmra.mxu0 %vm354_vm0, %v2214_v24 }
  0x9d   : > { %1610 = vmatmul.msk.f32.gmra.mxu0 %vm354_vm0, %v2228_v28 }
  0xa5   : > { %1611 = vmatmul.msk.f32.gmra.mxu0 %vm354_vm0, %v2245_v33 }
  0xad   : > { %1612 = vmatmul.msk.f32.gmra.mxu0 %vm354_vm0, %v2252_v34 }
  0xb5   : > { %1613 = vmatmul.msk.f32.gmra.mxu0 %vm354_vm0, %v2257_v35 }
  0xba   : > { %v420_v36 = vpop.f32.mrf.mxu0 }
  0xbb   : > { %1722 = vtanh.f32 %v420_v36 }
  0xc1   : > { %v1723_v37 = vpop.eup %1722 }
  0xc2   : > { %v423_v38 = vpop.f32.mrf.mxu0  ;;  %516 = vmatmul.f32.vlgmr.msra.gmra.mxu1 %v1723_v37 }
  0xc3   : > { %1724 = vtanh.f32 %v423_v38 }
  0xc9   : > { %v1725_v39 = vpop.eup %1724 }
  0xca   : > { %v426_v40 = vpop.f32.mrf.mxu0  ;;  %519 = vmatmul.f32.gmra.mxu1 %v1725_v39 }
  0xcb   : > { %1726 = vtanh.f32 %v426_v40 }
  0xd1   : > { %v1727_v41 = vpop.eup %1726 }
  0xd2   : > { %v429_v42 = vpop.f32.mrf.mxu0  ;;  %522 = vmatmul.f32.gmra.mxu1 %v1727_v41 }
  0xd3   : > { %1728 = vtanh.f32 %v429_v42 }
  0xd9   : > { %v1729_v43 = vpop.eup %1728 }
  0xda   : > { %v432_v44 = vpop.f32.mrf.mxu0  ;;  %525 = vmatmul.f32.gmra.mxu1 %v1729_v43 }
  0xdb   : > { %1730 = vtanh.f32 %v432_v44 }
  0xe1   : > { %v1731_v45 = vpop.eup %1730 }
  0xe2   : > { %v435_v46 = vpop.f32.mrf.mxu0  ;;  %528 = vmatmul.f32.gmra.mxu1 %v1731_v45 }
  0xe3   : > { %1732 = vtanh.f32 %v435_v46 }
  0xe9   : > { %v1733_v47 = vpop.eup %1732 }
  0xea   : > { %v438_v48 = vpop.f32.mrf.mxu0  ;;  %531 = vmatmul.f32.gmra.mxu1 %v1733_v47 }
  0xeb   : > { %1734 = vtanh.f32 %v438_v48 }
  0xf1   : > { %v1735_v49 = vpop.eup %1734 }
  0xf2   : > { %v441_v50 = vpop.f32.mrf.mxu0  ;;  %534 = vmatmul.f32.gmra.mxu1 %v1735_v49 }
  0xf3   : > { %1736 = vtanh.f32 %v441_v50 }
  0xf9   : > { %v1737_v51 = vpop.eup %1736 }
  0xfa   : > { %v444_v52 = vpop.f32.mrf.mxu0  ;;  %537 = vmatmul.f32.gmra.mxu1 %v1737_v51 }
  0xfb   : > { %1738 = vtanh.f32 %v444_v52 }
 0x101   : > { %v1739_v53 = vpop.eup %1738 }
 0x102   : > { %v447_v54 = vpop.f32.mrf.mxu0  ;;  %540 = vmatmul.f32.gmra.mxu1 %v1739_v53 }
 0x103   : > { %1740 = vtanh.f32 %v447_v54 }
 0x109   : > { %v1741_v55 = vpop.eup %1740 }
 0x10a   : > { %v450_v56 = vpop.f32.mrf.mxu0  ;;  %543 = vmatmul.f32.gmra.mxu1 %v1741_v55 }
 0x10b   : > { %1742 = vtanh.f32 %v450_v56 }
 0x111   : > { %v1743_v57 = vpop.eup %1742 }
 0x112   : > { %v453_v58 = vpop.f32.mrf.mxu0  ;;  %546 = vmatmul.f32.gmra.mxu1 %v1743_v57 }
 0x113   : > { %1744 = vtanh.f32 %v453_v58 }
 0x119   : > { %v1745_v59 = vpop.eup %1744 }
 0x11a   : > { %v456_v60 = vpop.f32.mrf.mxu0  ;;  %549 = vmatmul.f32.gmra.mxu1 %v1745_v59 }
 0x11b   : > { %1746 = vtanh.f32 %v456_v60 }
 0x121   : > { %v1747_v61 = vpop.eup %1746 }
 0x122   : > { %v459_v62 = vpop.f32.mrf.mxu0  ;;  %552 = vmatmul.f32.gmra.mxu1 %v1747_v61 }
 0x123   : > { %1748 = vtanh.f32 %v459_v62 }
 0x129   : > { %v1749_v63 = vpop.eup %1748 }
 0x12a   : > { %v462_v0 = vpop.f32.mrf.mxu0  ;;  %555 = vmatmul.f32.vlgmr.msra.gmra.mxu2 %v1749_v63 }
 0x12b   : > { %1750 = vtanh.f32 %v462_v0  ;;  %967 = vmatpush.msra.mxu2 %v2165_v11 }
 0x12d   : > { %968 = vmatpush.msra.mxu2 %v2160_v10 }
 0x131   : > { %v1751_v1 = vpop.eup %1750 }
 0x132   : > { %v465_v2 = vpop.f32.mrf.mxu0  ;;  %558 = vmatmul.f32.gmra.mxu2 %v1751_v1 }
 0x133   : > { %1752 = vtanh.f32 %v465_v2 }
 0x139   : > { %v1753_v3 = vpop.eup %1752 }
 0x13a   : > { %561 = vmatmul.f32.gmra.mxu2 %v1753_v3 }
 0x13f   : > { %v517_v5 = vpop.f32.mrf.mxu1 }
 0x140   : > { %v574_v8 = vsel %vm568_vm1, %v517_v5, -1e+30 }
 0x141   : > { %v591_v11 = vsel %vm590_vm3, %v574_v8, -inf }
 0x147   : > { %v520_v9 = vpop.f32.mrf.mxu1 }
 0x148   : > { %v575_v10 = vsel %vm571_vm2, %v520_v9, -1e+30 }
 0x149   : > { %v592_v13 = vsel %vm590_vm3, %v575_v10, -inf }
 0x14a   : > { %v593_v15 = vmax.f32 %v591_v11, %v592_v13 }
 0x14c   : > { %v594_v16 = vrot.slane %v593_v15, 4 }
 0x14e   : > { %v595_v17 = vmax.f32 %v593_v15, %v594_v16 }
 0x14f   : > { %v523_v18 = vpop.f32.mrf.mxu1 }
 0x150   : > { %v596_v20 = vrot.slane %v595_v17, 2  ;;  %v576_v25 = vsel %vm568_vm1, %v523_v18, -1e+30 }
 0x151   : > { %v600_v31 = vsel %vm590_vm3, %v576_v25, -inf }
 0x152   : > { %v597_v21 = vmax.f32 %v595_v17, %v596_v20 }
 0x154   : > { %v598_v22 = vrot.slane %v597_v21, 1 }
 0x156   : > { %v599_v23 = vmax.f32 %v597_v21, %v598_v22 }
 0x157   : > { %v526_v26 = vpop.f32.mrf.mxu1 }
 0x158   : > { %v663_v27 = vsub.f32 %v574_v8, %v599_v23  ;;  %v664_v29 = vsub.f32 %v575_v10, %v599_v23  ;;  %v577_v30 = vsel %vm571_vm2, %v526_v26, -1e+30 }
 0x159   : > { %v601_v32 = vsel %vm590_vm3, %v577_v30, -inf }
 0x15a   : > { %v679_v36 = vmul.f32 1.442695, %v663_v27  ;;  %v681_v37 = vmul.f32 1.442695, %v664_v29  ;;  %v602_v38 = vmax.f32 %v600_v31, %v601_v32 }
 0x15c   : > { %1754 = vpow2.f32 %v679_v36  ;;  %v603_v39 = vrot.slane %v602_v38, 4 }
 0x15d   : > { %1756 = vpow2.f32 %v681_v37 }
 0x15e   : > { %v604_v40 = vmax.f32 %v602_v38, %v603_v39 }
 0x15f   : > { %v529_v41 = vpop.f32.mrf.mxu1 }
 0x160   : > { %v605_v42 = vrot.slane %v604_v40, 2  ;;  %v578_v51 = vsel %vm568_vm1, %v529_v41, -1e+30 }
 0x161   : > { %v609_v57 = vsel %vm590_vm3, %v578_v51, -inf }
 0x162   : > { %v1755_v43 = vpop.eup %1754  ;;  %v606_v44 = vmax.f32 %v604_v40, %v605_v42 }
 0x163   : > { %v2282_v45 = vpop.eup %1756  ;;  %v711_v46 = vsel %vm590_vm3, %v1755_v43, 0.0 }
 0x164   : > { %v712_v47 = vsel %vm590_vm3, %v2282_v45, 0.0  ;;  %v607_v48 = vrot.slane %v606_v44, 1 }
 0x165   : > { %v713_v49 = vadd.f32 %v712_v47, %v711_v46 }
 0x166   : > { %v608_v50 = vmax.f32 %v606_v44, %v607_v48 }
 0x167   : > { %v714_v52 = vrot.slane %v713_v49, 4  ;;  %v532_v53 = vpop.f32.mrf.mxu1 }
 0x168   : > { %v665_v54 = vsub.f32 %v576_v25, %v608_v50  ;;  %v666_v55 = vsub.f32 %v577_v30, %v608_v50  ;;  %v579_v56 = vsel %vm571_vm2, %v532_v53, -1e+30 }
 0x169   : > { %v610_v58 = vsel %vm590_vm3, %v579_v56, -inf  ;;  %v715_v59 = vadd.f32 %v714_v52, %v713_v49 }
 0x16a   : > { %v683_v60 = vmul.f32 1.442695, %v665_v54  ;;  %v685_v61 = vmul.f32 1.442695, %v666_v55  ;;  %v611_v62 = vmax.f32 %v609_v57, %v610_v58 }
 0x16b   : > { %v716_v63 = vrot.slane %v715_v59, 2 }
 0x16c   : > { %1758 = vpow2.f32 %v683_v60  ;;  %v612_v0 = vrot.slane %v611_v62, 4 }
 0x16d   : > { %1760 = vpow2.f32 %v685_v61  ;;  %v717_v1 = vadd.f32 %v716_v63, %v715_v59 }
 0x16e   : > { %v613_v2 = vmax.f32 %v611_v62, %v612_v0 }
 0x16f   : > { %v535_v3 = vpop.f32.mrf.mxu1  ;;  %v718_v4 = vrot.slane %v717_v1, 1 }
 0x170   : > { %v614_v5 = vrot.slane %v613_v2, 2  ;;  %v580_v20 = vsel %vm568_vm1, %v535_v3, -1e+30 }
 0x171   : > { %v719_v8 = vadd.f32 %v718_v4, %v717_v1  ;;  %v618_v29 = vsel %vm590_vm3, %v580_v20, -inf }
 0x172   : > { %v1759_v9 = vpop.eup %1758  ;;  %v615_v10 = vmax.f32 %v613_v2, %v614_v5 }
 0x173   : > { %v2293_v11 = vpop.eup %1760  ;;  %v720_v13 = vsel %vm590_vm3, %v1759_v9, 0.0  ;;  %1762 = vrcp.f32 %v719_v8 }
 0x174   : > { %v721_v15 = vsel %vm590_vm3, %v2293_v11, 0.0  ;;  %v616_v16 = vrot.slane %v615_v10, 1 }
 0x175   : > { %v722_v17 = vadd.f32 %v721_v15, %v720_v13 }
 0x176   : > { %v617_v18 = vmax.f32 %v615_v10, %v616_v16 }
 0x177   : > { %v723_v21 = vrot.slane %v722_v17, 4  ;;  %v538_v22 = vpop.f32.mrf.mxu1 }
 0x178   : > { %v667_v23 = vsub.f32 %v578_v51, %v617_v18  ;;  %v668_v25 = vsub.f32 %v579_v56, %v617_v18  ;;  %v581_v26 = vsel %vm571_vm2, %v538_v22, -1e+30 }
 0x179   : > { %v1763_v27 = vpop.eup %1762  ;;  %v619_v30 = vsel %vm590_vm3, %v581_v26, -inf  ;;  %v724_v31 = vadd.f32 %v723_v21, %v722_v17 }
 0x17a   : > { %v687_v32 = vmul.f32 1.442695, %v667_v23  ;;  %v689_v36 = vmul.f32 1.442695, %v668_v25  ;;  %v620_v37 = vmax.f32 %v618_v29, %v619_v30  ;;  %v791_v38 = vmul.f32 %v1763_v27, %v1755_v43 }
 0x17b   : > { %v725_v39 = vrot.slane %v724_v31, 2  ;;  %v792_v51 = vmul.f32 %v1763_v27, %v2282_v45 }
 0x17c   : > { %1764 = vpow2.f32 %v687_v32  ;;  %v621_v40 = vrot.slane %v620_v37, 4  ;;  %807 = vxpose.xlu0.b32.start [1/2] (short) (narrow) %v791_v38, 8 }
 0x17d   : > { %1766 = vpow2.f32 %v689_v36  ;;  %v726_v41 = vadd.f32 %v725_v39, %v724_v31 }
 0x17e   : > { %v622_v42 = vmax.f32 %v620_v37, %v621_v40 }
 0x17f   : > { %v541_v44 = vpop.f32.mrf.mxu1  ;;  %v727_v46 = vrot.slane %v726_v41, 1 }
 0x180   : > { %v623_v47 = vrot.slane %v622_v42, 2  ;;  %v582_v57 = vsel %vm568_vm1, %v541_v44, -1e+30 }
 0x181   : > { %v728_v48 = vadd.f32 %v727_v46, %v726_v41  ;;  %v627_v63 = vsel %vm590_vm3, %v582_v57, -inf }
 0x182   : > { %v1765_v49 = vpop.eup %1764  ;;  %v624_v50 = vmax.f32 %v622_v42, %v623_v47 }
 0x183   : > { %v2305_v52 = vpop.eup %1766  ;;  %v729_v53 = vsel %vm590_vm3, %v1765_v49, 0.0  ;;  %1768 = vrcp.f32 %v728_v48 }
 0x184   : > { %v730_v43 = vsel %vm590_vm3, %v2305_v52, 0.0  ;;  %v625_v54 = vrot.slane %v624_v50, 1  ;;  %808 = vxpose.xlu0.b32.end [2/2] (short) (narrow) %v792_v51, 8 }
 0x185   : > { %v731_v55 = vadd.f32 %v730_v43, %v729_v53 }
 0x186   : > { %v626_v56 = vmax.f32 %v624_v50, %v625_v54 }
 0x187   : > { %v732_v58 = vrot.slane %v731_v55, 4  ;;  %v544_v59 = vpop.f32.mrf.mxu1 }
 0x188   : > { %v669_v60 = vsub.f32 %v580_v20, %v626_v56  ;;  %v670_v61 = vsub.f32 %v581_v26, %v626_v56  ;;  %v583_v45 = vsel %vm571_vm2, %v544_v59, -1e+30 }
 0x189   : > { %v1769_v62 = vpop.eup %1768  ;;  %v628_v0 = vsel %vm590_vm3, %v583_v45, -inf  ;;  %v733_v1 = vadd.f32 %v732_v58, %v731_v55 }
 0x18a   : > { %v691_v2 = vmul.f32 1.442695, %v669_v60  ;;  %v693_v3 = vmul.f32 1.442695, %v670_v61  ;;  %v629_v4 = vmax.f32 %v627_v63, %v628_v0  ;;  %v793_v5 = vmul.f32 %v1769_v62, %v1759_v9 }
 0x18b   : > { %v734_v8 = vrot.slane %v733_v1, 2  ;;  %v794_v23 = vmul.f32 %v1769_v62, %v2293_v11 }
 0x18c   : > { %1770 = vpow2.f32 %v691_v2  ;;  %v630_v10 = vrot.slane %v629_v4, 4  ;;  %863 = vxpose.xlu1.b32.start [1/2] (short) (narrow) %v793_v5, 8 }
 0x18d   : > { %1772 = vpow2.f32 %v693_v3  ;;  %v735_v13 = vadd.f32 %v734_v8, %v733_v1 }
 0x18e   : > { %v631_v15 = vmax.f32 %v629_v4, %v630_v10 }
 0x18f   : > { %v547_v16 = vpop.f32.mrf.mxu1  ;;  %v736_v17 = vrot.slane %v735_v13, 1 }
 0x190   : > { %v632_v18 = vrot.slane %v631_v15, 2  ;;  %v584_v31 = vsel %vm568_vm1, %v547_v16, -1e+30 }
 0x191   : > { %v737_v20 = vadd.f32 %v736_v17, %v735_v13  ;;  %v636_v41 = vsel %vm590_vm3, %v584_v31, -inf }
 0x192   : > { %v1771_v21 = vpop.eup %1770  ;;  %v633_v22 = vmax.f32 %v631_v15, %v632_v18 }
 0x193   : > { %v2317_v25 = vpop.eup %1772  ;;  %v738_v26 = vsel %vm590_vm3, %v1771_v21, 0.0  ;;  %1774 = vrcp.f32 %v737_v20 }
 0x194   : > { %v739_v9 = vsel %vm590_vm3, %v2317_v25, 0.0  ;;  %v634_v27 = vrot.slane %v633_v22, 1  ;;  %864 = vxpose.xlu1.b32.end [2/2] (short) (narrow) %v794_v23, 8 }
 0x195   : > { %v740_v29 = vadd.f32 %v739_v9, %v738_v26 }
 0x196   : > { %v635_v30 = vmax.f32 %v633_v22, %v634_v27 }
 0x197   : > { %v741_v32 = vrot.slane %v740_v29, 4  ;;  %v550_v36 = vpop.f32.mrf.mxu1 }
 0x198   : > { %v671_v37 = vsub.f32 %v582_v57, %v635_v30  ;;  %v672_v38 = vsub.f32 %v583_v45, %v635_v30  ;;  %v585_v11 = vsel %vm571_vm2, %v550_v36, -1e+30 }
 0x199   : > { %v1775_v39 = vpop.eup %1774  ;;  %v742_v40 = vadd.f32 %v741_v32, %v740_v29  ;;  %v637_v42 = vsel %vm590_vm3, %v585_v11, -inf }
 0x19a   : > { %v695_v44 = vmul.f32 1.442695, %v671_v37  ;;  %v697_v46 = vmul.f32 1.442695, %v672_v38  ;;  %v638_v47 = vmax.f32 %v636_v41, %v637_v42  ;;  %v795_v48 = vmul.f32 %v1775_v39, %v1765_v49 }
 0x19b   : > { %v743_v50 = vrot.slane %v742_v40, 2  ;;  %v796_v59 = vmul.f32 %v1775_v39, %v2305_v52 }
 0x19c   : > { %1776 = vpow2.f32 %v695_v44  ;;  %v639_v51 = vrot.slane %v638_v47, 4  ;;  %918 = vxpose.xlu2.b32.start [1/2] (short) (narrow) %v795_v48, 8 }
 0x19d   : > { %1778 = vpow2.f32 %v697_v46  ;;  %v744_v53 = vadd.f32 %v743_v50, %v742_v40 }
 0x19e   : > { %v640_v43 = vmax.f32 %v638_v47, %v639_v51 }
 0x19f   : > { %v745_v54 = vrot.slane %v744_v53, 1  ;;  %v553_v5 = vpop.f32.mrf.mxu1 }
 0x1a0   : > { %v641_v55 = vrot.slane %v640_v43, 2  ;;  %v586_v15 = vsel %vm568_vm1, %v553_v5, -1e+30 }
 0x1a1   : > { %v746_v56 = vadd.f32 %v745_v54, %v744_v53  ;;  %v645_v20 = vsel %vm590_vm3, %v586_v15, -inf }
 0x1a2   : > { %v1777_v57 = vpop.eup %1776  ;;  %v642_v58 = vmax.f32 %v640_v43, %v641_v55 }
 0x1a3   : > { %v2329_v60 = vpop.eup %1778  ;;  %v747_v61 = vsel %vm590_vm3, %v1777_v57, 0.0  ;;  %1780 = vrcp.f32 %v746_v56 }
 0x1a4   : > { %v748_v49 = vsel %vm590_vm3, %v2329_v60, 0.0  ;;  %v643_v45 = vrot.slane %v642_v58, 1  ;;  %919 = vxpose.xlu2.b32.end [2/2] (short) (narrow) %v796_v59, 8 }
 0x1a5   : > { %v749_v62 = vadd.f32 %v748_v49, %v747_v61 }
 0x1a6   : > { %v644_v63 = vmax.f32 %v642_v58, %v643_v45 }
 0x1a7   : > { %v750_v0 = vrot.slane %v749_v62, 4 }
 0x1a8   : > { %v673_v1 = vsub.f32 %v584_v31, %v644_v63  ;;  %v674_v2 = vsub.f32 %v585_v11, %v644_v63 }
 0x1a9   : > { %v1781_v3 = vpop.eup %1780  ;;  %v751_v4 = vadd.f32 %v750_v0, %v749_v62 }
 0x1aa   : > { %v699_v8 = vmul.f32 1.442695, %v673_v1  ;;  %v701_v52 = vmul.f32 1.442695, %v674_v2  ;;  %v797_v10 = vmul.f32 %v1781_v3, %v1771_v21  ;;  %v798_v29 = vmul.f32 %v1781_v3, %v2317_v25 }
 0x1ab   : > { %v752_v13 = vrot.slane %v751_v4, 2 }
 0x1ac   : > { %1782 = vpow2.f32 %v699_v8  ;;  %973 = vxpose.xlu0.b32.start [1/2] (short) (narrow) %v797_v10, 8 }
 0x1ad   : > { %1784 = vpow2.f32 %v701_v52  ;;  %v556_v16 = vpop.f32.mrf.mxu2  ;;  %v753_v17 = vadd.f32 %v752_v13, %v751_v4 }
 0x1ae   : > { %v587_v18 = vsel %vm571_vm2, %v556_v16, -1e+30 }
 0x1af   : > { %v646_v22 = vsel %vm590_vm3, %v587_v18, -inf  ;;  %v754_v23 = vrot.slane %v753_v17, 1 }
 0x1b0   : > { %v647_v26 = vmax.f32 %v645_v20, %v646_v22 }
 0x1b1   : > { %v755_v9 = vadd.f32 %v754_v23, %v753_v17 }
 0x1b2   : > { %v1783_v21 = vpop.eup %1782  ;;  %v648_v27 = vrot.slane %v647_v26, 4 }
 0x1b3   : > { %v1785_v30 = vpop.eup %1784  ;;  %v756_v31 = vsel %vm590_vm3, %v1783_v21, 0.0  ;;  %1786 = vrcp.f32 %v755_v9 }
 0x1b4   : > { %v757_v32 = vsel %vm590_vm3, %v1785_v30, 0.0  ;;  %v649_v36 = vmax.f32 %v647_v26, %v648_v27  ;;  %974 = vxpose.xlu0.b32.end [2/2] (short) (narrow) %v798_v29, 8 }
 0x1b5   : > { %v758_v37 = vadd.f32 %v757_v32, %v756_v31  ;;  %v559_v38 = vpop.f32.mrf.mxu2 }
 0x1b6   : > { %v650_v11 = vrot.slane %v649_v36, 2  ;;  %v588_v25 = vsel %vm568_vm1, %v559_v38, -1e+30 }
 0x1b7   : > { %v759_v39 = vrot.slane %v758_v37, 4  ;;  %v654_v55 = vsel %vm590_vm3, %v588_v25, -inf }
 0x1b8   : > { %v651_v40 = vmax.f32 %v649_v36, %v650_v11 }
 0x1b9   : > { %v1787_v41 = vpop.eup %1786  ;;  %v760_v42 = vadd.f32 %v759_v39, %v758_v37 }
 0x1ba   : > { %v652_v44 = vrot.slane %v651_v40, 1  ;;  %v799_v46 = vmul.f32 %v1787_v41, %v1777_v57  ;;  %v800_v45 = vmul.f32 %v1787_v41, %v2329_v60 }
 0x1bb   : > { %v761_v47 = vrot.slane %v760_v42, 2 }
 0x1bc   : > { %v653_v48 = vmax.f32 %v651_v40, %v652_v44  ;;  %1028 = vxpose.xlu1.b32.start [1/2] (short) (narrow) %v799_v46, 8 }
 0x1bd   : > { %v562_v50 = vpop.f32.mrf.mxu2  ;;  %v762_v51 = vadd.f32 %v761_v47, %v760_v42 }
 0x1be   : > { %v675_v53 = vsub.f32 %v586_v15, %v653_v48  ;;  %v676_v43 = vsub.f32 %v587_v18, %v653_v48  ;;  %v589_v54 = vsel %vm571_vm2, %v562_v50, -1e+30 }
 0x1bf   : > { %v655_v56 = vsel %vm590_vm3, %v589_v54, -inf  ;;  %v763_v58 = vrot.slane %v762_v51, 1 }
 0x1c0   : > { %v703_v59 = vmul.f32 1.442695, %v675_v53  ;;  %v705_v57 = vmul.f32 1.442695, %v676_v43  ;;  %v656_v61 = vmax.f32 %v654_v55, %v655_v56  ;;  %v1348_v55 = vld [vmem:[#allocation5 + $0xd0] sm:$0xff]  ;;  %v1346_v56 = vld [vmem:[#allocation5 + $0xc0] sm:$0xff] }
 0x1c1   : > { %v764_v49 = vadd.f32 %v763_v58, %v762_v51 }
 0x1c2   : > { %1788 = vpow2.f32 %v703_v59  ;;  %v657_v6 = vrot.slane %v656_v61, 4  ;;  %v1970_v59 = vmov 1983009808  }
 0x1c3   : > { %1790 = vpow2.f32 %v705_v57  ;;  %v1252_v57 = vunpack.c.l.s4 %v1970_v59  ;;  %v1329_v59 = vld [vmem:[#allocation5 + $0x38] sm:$0xff] }
 0x1c4   : > { %v658_v62 = vmax.f32 %v656_v61, %v657_v6  ;;  %1029 = vxpose.xlu1.b32.end [2/2] (short) (narrow) %v800_v45, 8  ;;  %1792 = vrcp.f32 %v764_v49  ;;  %v1344_v61 = vld [vmem:[#allocation5 + $0xb0] sm:$0xff]  ;;  %v1342_v6 = vld [vmem:[#allocation5 + $0xa0] sm:$0xff] }
 0x1c6   : > { %v659_v63 = vrot.slane %v658_v62, 2 }
 0x1c8   : > { %v1789_v7 = vpop.eup %1788  ;;  %v660_v0 = vmax.f32 %v658_v62, %v659_v63  ;;  %v1253_v62 = vunpack.c.0.s8 %v1252_v57  ;;  %v1327_v57 = vld [vmem:[#allocation5 + $0x28] sm:$0xff] }
 0x1c9   : > { %v1791_v1 = vpop.eup %1790  ;;  %v765_v2 = vsel %vm590_vm3, %v1789_v7, 0.0 }
 0x1ca   : > { %v1793_v3 = vpop.eup %1792  ;;  %v766_v4 = vsel %vm590_vm3, %v1791_v1, 0.0  ;;  %v661_v5 = vrot.slane %v660_v0, 1 }
 0x1cb   : > { %v767_v8 = vadd.f32 %v766_v4, %v765_v2  ;;  %v801_v52 = vmul.f32 %v1793_v3, %v1783_v21  ;;  %v802_v22 = vmul.f32 %v1793_v3, %v1785_v30  ;;  %v1338_v3 = vld [vmem:[#allocation5 + $0x80] sm:$0xff] }
 0x1cc   : > { %v662_v10 = vmax.f32 %v660_v0, %v661_v5  ;;  %v1340_v0 = vld [vmem:[#allocation5 + $0x90] sm:$0xff] }
 0x1cd   : > { %v768_v13 = vrot.slane %v767_v8, 4  ;;  %1083 = vxpose.xlu2.b32.start [1/2] (short) (narrow) %v801_v52, 8 }
 0x1ce   : > { %v677_v60 = vsub.f32 %v588_v25, %v662_v10  ;;  %v678_v15 = vsub.f32 %v589_v54, %v662_v10  ;;  %v1352_v54 = vld [vmem:[#allocation5 + $0xf0] sm:$0xff]  ;;  %v1334_v10 = vld [vmem:[#allocation5 + $0x60] sm:$0xff] }
 0x1cf   : > { %v769_v16 = vadd.f32 %v768_v13, %v767_v8  ;;  %v1336_v8 = vld [vmem:[#allocation5 + $0x70] sm:$0xff] }
 0x1d0   : > { %v707_v17 = vmul.f32 1.442695, %v677_v60  ;;  %v709_v18 = vmul.f32 1.442695, %v678_v15  ;;  %v1971_v60 = vmov 1934713408  }
 0x1d1   : > { %v770_v20 = vrot.slane %v769_v16, 2  ;;  %v1278_v15 = vunpack.c.l.s4 %v1971_v60 }
 0x1d2   : > { %1794 = vpow2.f32 %v707_v17  ;;  %v1332_v17 = vld [vmem:[#allocation5 + $0x50] sm:$0xff] }
 0x1d3   : > { %1796 = vpow2.f32 %v709_v18  ;;  %v771_v23 = vadd.f32 %v770_v20, %v769_v16 }
 0x1d5   : > { %1084 = vxpose.xlu2.b32.end [2/2] (short) (narrow) %v802_v22, 8  ;;  %v772_v26 = vrot.slane %v771_v23, 1 }
 0x1d7   : > { %v773_v9 = vadd.f32 %v772_v26, %v771_v23  ;;  %v1330_v23 = vld [vmem:[#allocation5 + $0x40] sm:$0xff] }
 0x1d8   : > { %v1795_v27 = vpop.eup %1794 }
 0x1d9   : > { %v1797_v29 = vpop.eup %1796  ;;  %v774_v21 = vsel %vm590_vm3, %v1795_v27, 0.0  ;;  %1798 = vrcp.f32 %v773_v9  ;;  %v1279_v9 = vunpack.c.0.s8 %v1278_v15 }
 0x1da   : > { %v775_v31 = vsel %vm590_vm3, %v1797_v29, 0.0 }
 0x1db   : > { %v776_v32 = vadd.f32 %v775_v31, %v774_v21 }
 0x1dd   : > { %v777_v36 = vrot.slane %v776_v32, 4 }
 0x1df   : > { %v1799_v37 = vpop.eup %1798  ;;  %v778_v38 = vadd.f32 %v777_v36, %v776_v32 }
 0x1e0   : > { %v803_v11 = vmul.f32 %v1799_v37, %v1789_v7  ;;  %v804_v42 = vmul.f32 %v1799_v37, %v1791_v1  ;;  %v1326_v37 = vld [vmem:[#allocation5 + $0x20] sm:$0xff] }
 0x1e1   : > { %v779_v39 = vrot.slane %v778_v38, 2 }
 0x1e2   : > { %1138 = vxpose.xlu0.b32.start [1/2] (short) (narrow) %v803_v11, 8 }
 0x1e3   : > { %v780_v40 = vadd.f32 %v779_v39, %v778_v38 }
 0x1e5   : > { %v781_v30 = vrot.slane %v780_v40, 1 }
 0x1e7   : > { %v782_v41 = vadd.f32 %v781_v30, %v780_v40 }
 0x1e9   : > { %1800 = vrcp.f32 %v782_v41 }
 0x1ea   : > { %1139 = vxpose.xlu0.b32.end [2/2] (short) (narrow) %v804_v42, 8 }
 0x1ef   : > { %v1801_v44 = vpop.eup %1800 }
 0x1f0   : > { %v805_v46 = vmul.f32 %v1801_v44, %v1795_v27  ;;  %v806_v47 = vmul.f32 %v1801_v44, %v1797_v29  ;;  %v1328_v29 = vld [vmem:[#allocation5 + $0x30] sm:$0xff] }
 0x1f2   : > { %1193 = vxpose.xlu1.b32.start [1/2] (short) (narrow) %v805_v46, 8 }
 0x1fa   : > { %1194 = vxpose.xlu1.b32.end [2/2] (short) (narrow) %v806_v47, 8 }
 0x220   : > { %v823_v48 = vpop.trf.xlu0 }
 0x221   : > { %1614 = vmatmul.msk.f32.vlgmr.msrb.gmra.mxu2 %vm839_vm4, %v823_v48 }
 0x222   : > { %1077 = vmatpush.msrb.mxu2 %v2180_v14 }
 0x224   : > { %1078 = vmatpush.msrb.mxu2 %v2172_v12 }
 0x230   : > { %v879_v25 = vpop.trf.xlu1 }
 0x231   : > { %1615 = vmatmul.msk.f32.vlgmr.msra.gmra.mxu3 %vm839_vm4, %v879_v25 }
 0x232   : > { %1132 = vmatpush.msra.mxu3 %v2214_v24 }
 0x234   : > { %1133 = vmatpush.msra.mxu3 %v2197_v19 }
 0x235   : > { %v934_v50 = vpop.trf.xlu2 }
 0x236   : > { %1616 = vmatmul.msk.f32.vlgmr.msra.gmra.mxu2 %vm839_vm4, %v934_v50 }
 0x237   : > { %1187 = vmatpush.msra.mxu2 %v2245_v33 }
 0x239   : > { %1188 = vmatpush.msra.mxu2 %v2228_v28 }
 0x250   : > { %v989_v51 = vpop.trf.xlu0 }
 0x251   : > { %1617 = vmatmul.msk.f32.vlgmr.msrb.gmra.mxu3 %vm839_vm4, %v989_v51 }
 0x252   : > { %1242 = vmatpush.msrb.mxu3 %v2257_v35  ;;  %v1350_v35 = vld [vmem:[#allocation5 + $0xe0] sm:$0xff] }
 0x254   : > { %1243 = vmatpush.msrb.mxu3 %v2252_v34 }
 0x260   : > { %v1044_v12 = vpop.trf.xlu1 }
 0x261   : > { %1618 = vmatmul.msk.f32.vlgmr.msrb.gmra.mxu2 %vm839_vm4, %v1044_v12  ;;  %v1324_v12 = vld [vmem:[#allocation5 + $0x10] sm:$0xff] }
 0x266   : > { %v1099_v14 = vpop.trf.xlu2 }
 0x267   : > { %1619 = vmatmul.msk.f32.vlgmr.msra.gmra.mxu3 %vm839_vm4, %v1099_v14  ;;  %v1322_v14 = vld [vmem:[#allocation5] sm:$0xff] }
 0x268   : > { %1360 = vmatpush.msra.mxu3 %v1352_v54  ;;  %v1341_v54 = vld [vmem:[#allocation5 + $0x98] sm:$0xff] }
 0x26a   : > { %1361 = vmatpush.msra.mxu3 %v1350_v35  ;;  %v1339_v35 = vld [vmem:[#allocation5 + $0x88] sm:$0xff] }
 0x26c   : > { %1362 = vmatpush.msra.mxu3 %v1348_v55  ;;  %v1335_v55 = vld [vmem:[#allocation5 + $0x68] sm:$0xff] }
 0x26e   : > { %1363 = vmatpush.msra.mxu3 %v1346_v56  ;;  %v1333_v56 = vld [vmem:[#allocation5 + $0x58] sm:$0xff] }
 0x270   : > { %1364 = vmatpush.msra.mxu3 %v1344_v61  ;;  %v1325_v61 = vld [vmem:[#allocation5 + $0x18] sm:$0xff] }
 0x272   : > { %1365 = vmatpush.msra.mxu3 %v1342_v6  ;;  %v1417_v6 = vld [vmem:[#allocation7 + $0x78] sm:$0xff] }
 0x273   : > { %1438 = vmatpush.msrb.mxu2 %v1417_v6 }
 0x274   : > { %1366 = vmatpush.msra.mxu3 %v1340_v0  ;;  %v1412_v0 = vld [vmem:[#allocation7 + $0x50] sm:$0xff] }
 0x276   : > { %1367 = vmatpush.msra.mxu3 %v1338_v3  ;;  %v1409_v3 = vld [vmem:[#allocation7 + $0x38] sm:$0xff] }
 0x278   : > { %1368 = vmatpush.msra.mxu3 %v1336_v8  ;;  %v1407_v8 = vld [vmem:[#allocation7 + $0x28] sm:$0xff] }
 0x27a   : > { %1369 = vmatpush.msra.mxu3 %v1334_v10 }
 0x27c   : > { %1370 = vmatpush.msra.mxu3 %v1332_v17  ;;  %v1405_v17 = vld [vmem:[#allocation7 + $0x18] sm:$0xff] }
 0x27e   : > { %1371 = vmatpush.msra.mxu3 %v1330_v23  ;;  %v1430_v23 = vld [vmem:[#allocation7 + $0xe0] sm:$0xff] }
 0x280   : > { %1372 = vmatpush.msra.mxu3 %v1328_v29  ;;  %v1426_v29 = vld [vmem:[#allocation7 + $0xc0] sm:$0xff] }
 0x282   : > { %1373 = vmatpush.msra.mxu3 %v1326_v37  ;;  %v1423_v37 = vld [vmem:[#allocation7 + $0xa8] sm:$0xff] }
 0x284   : > { %1374 = vmatpush.msra.mxu3 %v1324_v12 }
 0x286   : > { %v1154_v19 = vpop.trf.xlu0  ;;  %1375 = vmatpush.msra.mxu3 %v1322_v14  ;;  %v1721_v14 = vld [vmem:[%s2432_s6] ss:$0 sm:$0xff] }
 0x287   : > { %1620 = vmatmul.msk.f32.vlgmr.msra.gmra.mxu2 %vm839_vm4, %v1154_v19  ;;  %v1353_v19 = vld [vmem:[#allocation5 + $0xf8] sm:$0xff] }
 0x296   : > { %v1209_v24 = vpop.trf.xlu1 }
 0x297   : > { %1621 = vmatmul.msk.f32.vlgmr.msrb.gmra.mxu3 %vm839_vm4, %v1209_v24  ;;  %v1351_v24 = vld [vmem:[#allocation5 + $0xe8] sm:$0xff] }
 0x298   : > { %1380 = vmatpush.msrb.mxu3 %v1353_v19 }
 0x29a   : > { %1381 = vmatpush.msrb.mxu3 %v1351_v24 }
 0x2a4   : > { %v860_v28 = vpop.f32.mrf.mxu2 }
 0x2b4   : > { %v915_v53 = vpop.f32.mrf.mxu3 }
 0x2b9   : > { %v970_v33 = vpop.f32.mrf.mxu2 }
 0x2ba   : > { %v1248_v58 = vrot.slane %v970_v33, 4  ;;  %v1347_v33 = vld [vmem:[#allocation5 + $0xc8] sm:$0xff] }
 0x2bc   : > { %v1250_v45 = vsel %vm1249_vm5, %v1248_v58, %v860_v28  ;;  %v1349_v28 = vld [vmem:[#allocation5 + $0xd8] sm:$0xff]  ;;  %v1331_v58 = vld [vmem:[#allocation5 + $0x48] sm:$0xff] }
 0x2bd   : > { %v1254_v2 = vperm.slane %v1250_v45, %v1253_v62  ;;  %1382 = vmatpush.msrb.mxu3 %v1349_v28  ;;  %v1416_v45 = vld [vmem:[#allocation7 + $0x70] sm:$0xff] }
 0x2be   : > { %1439 = vmatpush.msrb.mxu2 %v1416_v45 }
 0x2bf   : > { %v1275_v52 = vrot.slane %v1254_v2, 4  ;;  %1383 = vmatpush.msrb.mxu3 %v1347_v33 }
 0x2d4   : > { %v1025_v34 = vpop.f32.mrf.mxu3 }
 0x2d5   : > { %v1255_v49 = vrot.slane %v1025_v34, 4  ;;  %v1337_v34 = vld [vmem:[#allocation5 + $0x78] sm:$0xff] }
 0x2d7   : > { %v1256_v1 = vsel %vm1249_vm5, %v1255_v49, %v915_v53  ;;  %v1345_v53 = vld [vmem:[#allocation5 + $0xb8] sm:$0xff]  ;;  %v1323_v49 = vld [vmem:[#allocation5 + $0x8] sm:$0xff] }
 0x2d8   : > { %v1260_v5 = vperm.slane %v1256_v1, %v1253_v62  ;;  %1384 = vmatpush.msrb.mxu3 %v1345_v53  ;;  %v1411_v1 = vld [vmem:[#allocation7 + $0x48] sm:$0xff] }
 0x2da   : > { %v1273_v16 = vrot.slane %v1260_v5, 4  ;;  %v1276_v22 = vsel %vm1249_vm5, %v1260_v5, %v1275_v52  ;;  %v1406_v52 = vld [vmem:[#allocation7 + $0x20] sm:$0xff] }
 0x2db   : > { %v1284_v31 = vperm.slane %v1276_v22, %v1279_v9  ;;  %v1431_v22 = vld [vmem:[#allocation7 + $0xe8] sm:$0xff] }
 0x2dc   : > { %v1274_v27 = vsel %vm1249_vm5, %v1273_v16, %v1254_v2  ;;  %v1410_v2 = vld [vmem:[#allocation7 + $0x40] sm:$0xff]  ;;  %v1433_v16 = vld [vmem:[#allocation7 + $0xf8] sm:$0xff] }
 0x2dd   : > { %v1280_v38 = vperm.slane %v1274_v27, %v1279_v9  ;;  %v1303_v30 = vrot.slane %v1284_v31, 4  ;;  %v1427_v27 = vld [vmem:[#allocation7 + $0xc8] sm:$0xff] }
 0x2df   : > { %v1299_v47 = vrot.slane %v1280_v38, 4 }
 0x2e4   : > { %v1080_v43 = vpop.f32.mrf.mxu2 }
 0x2ea   : > { %v1135_v7 = vpop.f32.mrf.mxu3 }
 0x30a   : > { %v1190_v63 = vpop.f32.mrf.mxu2 }
 0x30b   : > { %v1261_v4 = vrot.slane %v1190_v63, 4  ;;  %v1414_v63 = vld [vmem:[#allocation7 + $0x60] sm:$0xff] }
 0x30d   : > { %v1262_v13 = vsel %vm1249_vm5, %v1261_v4, %v1080_v43  ;;  %v1343_v43 = vld [vmem:[#allocation5 + $0xa8] sm:$0xff]  ;;  %v1408_v4 = vld [vmem:[#allocation7 + $0x30] sm:$0xff] }
 0x30e   : > { %v1266_v18 = vperm.slane %v1262_v13, %v1253_v62  ;;  %1385 = vmatpush.msrb.mxu3 %v1343_v43 }
 0x310   : > { %v1287_v32 = vrot.slane %v1266_v18, 4  ;;  %1386 = vmatpush.msrb.mxu3 %v1341_v54 }
 0x312   : > { %1387 = vmatpush.msrb.mxu3 %v1339_v35 }
 0x314   : > { %1388 = vmatpush.msrb.mxu3 %v1337_v34 }
 0x316   : > { %1389 = vmatpush.msrb.mxu3 %v1335_v55 }
 0x318   : > { %1390 = vmatpush.msrb.mxu3 %v1333_v56 }
 0x31a   : > { %v1245_v20 = vpop.f32.mrf.mxu3  ;;  %1391 = vmatpush.msrb.mxu3 %v1331_v58 }
 0x31b   : > { %v1267_v26 = vrot.slane %v1245_v20, 4  ;;  %v1432_v20 = vld [vmem:[#allocation7 + $0xf0] sm:$0xff] }
 0x31c   : > { %1392 = vmatpush.msrb.mxu3 %v1329_v59 }
 0x31d   : > { %v1268_v21 = vsel %vm1249_vm5, %v1267_v26, %v1135_v7  ;;  %v1413_v7 = vld [vmem:[#allocation7 + $0x58] sm:$0xff] }
 0x31e   : > { %v1272_v36 = vperm.slane %v1268_v21, %v1253_v62  ;;  %1393 = vmatpush.msrb.mxu3 %v1327_v57  ;;  %v1415_v62 = vld [vmem:[#allocation7 + $0x68] sm:$0xff]  ;;  %v1429_v26 = vld [vmem:[#allocation7 + $0xd8] sm:$0xff] }
 0x31f   : > { %1440 = vmatpush.msrb.mxu2 %v1415_v62  ;;  %v1425_v21 = vld [vmem:[#allocation7 + $0xb8] sm:$0xff] }
 0x320   : > { %v1285_v11 = vrot.slane %v1272_v36, 4  ;;  %v1288_v39 = vsel %vm1249_vm5, %v1272_v36, %v1287_v32  ;;  %1394 = vmatpush.msrb.mxu3 %v1325_v61  ;;  %v1424_v32 = vld [vmem:[#allocation7 + $0xb0] sm:$0xff]  ;;  %v1403_v36 = vld [vmem:[#allocation7 + $0x8] sm:$0xff] }
 0x321   : > { %v1296_v40 = vperm.slane %v1288_v39, %v1279_v9  ;;  %1441 = vmatpush.msrb.mxu2 %v1414_v63  ;;  %v1421_v39 = vld [vmem:[#allocation7 + $0x98] sm:$0xff] }
 0x322   : > { %v1286_v41 = vsel %vm1249_vm5, %v1285_v11, %v1266_v18  ;;  %1395 = vmatpush.msrb.mxu3 %v1323_v49  ;;  %v1422_v11 = vld [vmem:[#allocation7 + $0xa0] sm:$0xff] }
 0x323   : > { %v1304_v42 = vsel %vm1249_vm5, %v1296_v40, %v1303_v30  ;;  %v1301_v44 = vrot.slane %v1296_v40, 4  ;;  %v1292_v46 = vperm.slane %v1286_v41, %v1279_v9  ;;  %1442 = vmatpush.msrb.mxu2 %v1413_v7  ;;  %v1428_v9 = vld [vmem:[#allocation7 + $0xd0] sm:$0xff]  ;;  %v1419_v30 = vld [vmem:[#allocation7 + $0x88] sm:$0xff]  ;;  %v1418_v41 = vld [vmem:[#allocation7 + $0x80] sm:$0xff] }
 0x324   : > { %1314 = vrot.lane.b32.xlu1 %v1304_v42, %s1972_s15  ;;  %v1420_v40 = vld [vmem:[#allocation7 + $0x90] sm:$0xff]  ;;  %v1354_v42 = vld [vmem:[%s2430_s4] sm:$0x3]  ;;  %s1494_s15 = sshll.u32 %s1490_s23, 4  ;;  %s1495_s15 = int_to_ptr.hbm [resolvable:$true] %s1494_s15 }
 0x325   : > { %v1302_v48 = vsel %vm1249_vm5, %v1301_v44, %v1284_v31  ;;  %v1300_v25 = vsel %vm1249_vm5, %v1292_v46, %v1299_v47  ;;  %v1297_v50 = vrot.slane %v1292_v46, 4  ;;  %1443 = vmatpush.msrb.mxu2 %v1412_v0  ;;  %v1404_v31 = vld [vmem:[#allocation7 + $0x10] sm:$0xff]  ;;  %v1356_v44 = vperm.slane %v1354_v42, 0 }
 0x326   : > { %1310 = vrot.lane.b32.xlu0 %v1302_v48, %s1973_s22  ;;  %1306 = vrot.lane.b32.xlu2 %v1300_v25, %s1974_s21  ;;  %v1357_v25 = vperm.slane %v1354_v42, 1  ;;  %s1906_s22 = sshra.s32 %s1495_s15, 4  ;;  %s1907_s22 = int_to_ptr.hbm [resolvable:$true] %s1906_s22 }
 0x327   : > { %v2382_v51 = vsel %vm1249_vm5, %v1297_v50, %v1280_v38  ;;  %1444 = vmatpush.msrb.mxu2 %v1411_v1  ;;  %v1402_v38 = vld [vmem:[#allocation7] sm:$0xff]  ;;  %s1908_s21 = scalar_lea.hbm %s1907_s22, 8  ;;  %p1913_p11 = scmp.lt.s32.totalorder %s1907_s22, %s2433_s7 }
 0x328   : > { %p1909_p1 = scmp.ne.s32.totalorder %s1907_s22, %s1908_s21  ;;  %p1914_p9 = scmp.lt.s32.totalorder %s1912_s10, %s1908_s21 }
 0x329   : > { %1445 = vmatpush.msrb.mxu2 %v1410_v2 }
 0x32a   : > { %p1910_p4 = pnand %p1909_p1, %p2087_p5  ;;  %p1915_p2 = por %p1914_p9, %p1913_p11 }
 0x32b   : > { %1446 = vmatpush.msrb.mxu2 %v1409_v3 }
 0x32c   : > { %p1911_p8 = pneg %p1910_p4 }
 0x32d   : > { %1447 = vmatpush.msrb.mxu2 %v1408_v4 }
 0x32e   : > { %p1916_p10 = pnand %p1915_p2, %p1911_p8 }
 0x32f   : > { %1448 = vmatpush.msrb.mxu2 %v1407_v8 }
 0x331   : > { %1449 = vmatpush.msrb.mxu2 %v1406_v52 }
 0x333   : > { %1450 = vmatpush.msrb.mxu2 %v1405_v17 }
 0x335   : > { %1451 = vmatpush.msrb.mxu2 %v1404_v31 }
 0x337   : > { %1452 = vmatpush.msrb.mxu2 %v1403_v36 }
 0x339   : > { %1453 = vmatpush.msrb.mxu2 %v1402_v38 }
 0x380   : > { %v1307_v5 = vpop.permute.xlu2 %1306 }
 0x381   : > { %v1317_v10 = vsel %vm354_vm0, %v2382_v51, %v1307_v5 }
 0x396   : > { %v1315_v60 = vpop.permute.xlu1 %1314 }
 0x398   : > { %v1311_v13 = vpop.permute.xlu0 %1310 }
 0x399   : > { %v1319_v15 = vsel %vm1318_vm6, %v1317_v10, %v1311_v13 }
 0x39a   : > { %v1321_v18 = vsel %vm1320_vm7, %v1319_v15, %v1315_v60 }
 0x39b   : > { %1376 = vmatmul.f32.vlgmr.msra.gmra.mxu3 %v1321_v18 }
 0x39c   : > { %1458 = vmatpush.msra.mxu3 %v1433_v16 }
 0x39e   : > { %1459 = vmatpush.msra.mxu3 %v1432_v20 }
 0x3a0   : > { %1460 = vmatpush.msra.mxu3 %v1431_v22 }
 0x3a2   : > { %1461 = vmatpush.msra.mxu3 %v1430_v23 }
 0x3a3   : > { %1396 = vmatmul.f32.vlgmr.msrb.gmra.mxu3 %v1321_v18 }
 0x3a4   : > { %1462 = vmatpush.msra.mxu3 %v1429_v26 }
 0x3a6   : > { %1463 = vmatpush.msra.mxu3 %v1428_v9 }
 0x3a8   : > { %1464 = vmatpush.msra.mxu3 %v1427_v27 }
 0x3aa   : > { %1465 = vmatpush.msra.mxu3 %v1426_v29 }
 0x3ac   : > { %1466 = vmatpush.msra.mxu3 %v1425_v21 }
 0x3ae   : > { %1467 = vmatpush.msra.mxu3 %v1424_v32 }
 0x3b0   : > { %1468 = vmatpush.msra.mxu3 %v1423_v37 }
 0x3b2   : > { %1469 = vmatpush.msra.mxu3 %v1422_v11 }
 0x3b4   : > { %1470 = vmatpush.msra.mxu3 %v1421_v39 }
 0x3b6   : > { %1471 = vmatpush.msra.mxu3 %v1420_v40 }
 0x3b8   : > { %1472 = vmatpush.msra.mxu3 %v1419_v30 }
 0x3ba   : > { %1473 = vmatpush.msra.mxu3 %v1418_v41 }
 0x41e   : > { %v1377_v46 = vpop.f32.mrf.mxu3 }
 0x41f   : > { %v1378_v47 = vadd.f32 %v1377_v46, %v1356_v44 }
 0x421   : > { %v1400_v48 = vmax.f32 %v1378_v47, 0.0 }
 0x423   : > { %1454 = vmatmul.f32.vlgmr.msrb.gmra.mxu2 %v1400_v48 }
 0x426   : > { %v1397_v50 = vpop.f32.mrf.mxu3 }
 0x427   : > { %v1398_v51 = vadd.f32 %v1397_v50, %v1357_v25 }
 0x429   : > { %v1401_v12 = vmax.f32 %v1398_v51, 0.0 }
 0x42b   : > { %1474 = vmatmul.f32.vlgmr.msra.gmra.mxu3 %v1401_v12 }
 0x4a6   : > { %v1455_v19 = vpop.f32.mrf.mxu2 }
 0x4a7   : > { %v1456_v24 = vadd.f32 %v1721_v14, %v1455_v19 }
 0x4ae   : > { %v1475_v28 = vpop.f32.mrf.mxu3 }
 0x4af   : > { %v1476_v33 = vadd.f32 %v1475_v28, %v1456_v24 }
 0x4b1   : > { %1478 = vst [vmem:[%s332_s3] sm:$0xff] %v1476_v33 }
 0x4b2   : > { %1919 = shalt.err (!%p1916_p10)
}
 0x4b3   : > { %1654 = dma.vmem_to_hbm [thread:$0]  (%p2087_p5), %s1493_s12, 128, %s1495_s15, %s1480_s28  }
 0x4b4 PF: > { %s1506_s16 = sand.u32 1, %s1950_s24   ;;  %p2445_p12 = scmp.ge.s32.totalorder %s1962_s27, 2 }
 0x4b5   : > { %s1507_s19 = scalar_lea.sflag [#allocation4], %s1506_s16 }
 0x4b6   : > { %p1668_p13 = pnand %p2445_p12, %p2050_p6 }
 0x4b8   : > { %p1669_p0 = pneg %p1668_p13 }
 0x4ba   : > { %1945 = dma.done.wait (%p1669_p0), %s1507_s19, 128  }
 0x4bb   : > { %1947 = vsyncadd (%p1669_p0), %s1507_s19, 4294967168  ;;  %p21_p3 = scmp.ge.s32.totalorder %s2074_s29, 4   ;;  %s2446_s24 = smov %s1954_s25 }
 0x4bc   : > { %s2447_s25 = smov %s1958_s26  ;;  %s2448_s26 = smov %s2083_s11 }
 0x4bd   : > { %s2449_s27 = smov %s2074_s29  ;;  %23 = sbr.rel (!%p21_p3) target bundleno = 8 (0x8), region = 101 }
 0x4c2   :  { %1513 = vsyncpa [#allocation3], 1 }
 0x4c3   :  { %1515 = vsyncpa [#allocation3 + $0x1], 1 }
 0x4c4   :  { %1516 = vsyncpa [#allocation6], 1 }
 0x4c5   :  { %1517 = vsyncpa [#allocation4], 1 }
 0x4c6   :  { %1519 = vsyncpa [#allocation4 + $0x1], 1 }

</bundles_post_ra>
